<compile_context>
chip_gen: v5e
topology: v5e:2x2
jax: 0.10.0
libtpu: 0.0.40
codegen_flags: <defaults>
</compile_context>

<pallas_src>
import jax
import jax.numpy as jnp
from jax.experimental import pallas as pl
from jax.experimental.pallas import tpu as pltpu


def _round_up(a, b):
    return (a + b - 1) // b * b


def _sublane_pack(dtype):
    # Rows per packed 32-bit sublane word: f32 -> 8, bf16 -> 16, int8/fp8 -> 32.
    return 32 // jnp.dtype(dtype).itemsize


def _generation_params():
    """Per-chip output-tile budget / scoped-VMEM limit / TensorCores per chip."""
    kind = ""
    try:
        kind = jax.devices()[0].device_kind.lower().replace(" ", "")
    except Exception:
        pass
    if "v5lite" in kind or "v5e" in kind:
        # ~820 GB/s HBM, 16 MiB default scoped VMEM (raise it a little for headroom).
        return {"tile_budget": 7 << 20, "vmem_limit": 32 << 20, "cores": 1}
    if "v6" in kind or "trillium" in kind:
        # ~1.3-1.4 TB/s HBM, 128 MiB physical VMEM.
        return {"tile_budget": 14 << 20, "vmem_limit": 64 << 20, "cores": 1}
    if "v7" in kind or "tpu7" in kind:
        # ~3.2 TB/s HBM but only 64 MiB physical VMEM; 2 TensorCores per chip.
        return {"tile_budget": 16 << 20, "vmem_limit": 48 << 20, "cores": 2}
    # Unknown generation: conservative, fits every default scoped-VMEM limit.
    return {"tile_budget": 8 << 20, "vmem_limit": 32 << 20, "cores": 1}


def _pe1dex_kernel(x_ref, y_ref, o_ref):
    # x_ref: VMEM (tq, D)   rows of the (possibly lane-folded) x table prefix
    # y_ref: VMEM (tk, D)   rows of the (possibly lane-folded) y table prefix
    # o_ref: VMEM (tq, tk, D)   o[a, b, :] = x[a, :] + y[b, :]
    # The cast (e.g. f32 -> bf16 output) happens at the store; the add has huge VPU slack.
    o_ref[...] = (x_ref[...][:, None, :] + y_ref[...][None, :, :]).astype(o_ref.dtype)


_Y_RESIDENT_BYTES = 2 << 20  # keep the y prefix fully VMEM-resident below this size


def _broadcast_add_pallas(xw, yw, out_dtype, tq=None, tk=None,
                          tile_budget_bytes=None, vmem_limit_bytes=None):
    """out[i, j, :] = xw[i, :] + yw[j, :]  -> (Q, K, D) in out_dtype."""
    Q, D = xw.shape
    K, D2 = yw.shape
    assert D == D2
    in_itemsize = jnp.dtype(xw.dtype).itemsize
    out_itemsize = jnp.dtype(out_dtype).itemsize
    pack = max(_sublane_pack(xw.dtype), _sublane_pack(out_dtype))

    gen = _generation_params()
    if tile_budget_bytes is None:
        tile_budget_bytes = gen["tile_budget"]
    if vmem_limit_bytes is None:
        vmem_limit_bytes = gen["vmem_limit"]

    # ---- tk: prefer the full key extent (contiguous output slabs, y DMA'd once).
    if tk is None:
        if K * D * in_itemsize <= _Y_RESIDENT_BYTES:
            tk = K
        else:
            tk = min(K, max(1, _Y_RESIDENT_BYTES // (D * in_itemsize)))
            tk = (tk // pack) * pack
            if tk < pack:
                tk = K  # degenerate (a single key row is already huge): full extent
    tk = min(tk, K)
    full_k = tk >= K
    if full_k:
        tk = K
    assert tk == K or tk % pack == 0, (tk, K, pack)

    # ---- tq: fill the per-tile VMEM budget (output tiles are double-buffered).
    if tq is None:
        row_bytes = tk * D * out_itemsize
        tq = min(Q, max(1, tile_budget_bytes // max(1, row_bytes)))
        if tq < Q:  # partial tiling along Q: keep blocks a sublane-pack multiple
            tq = min(Q, max(pack, (tq // pack) * pack))
        # Balance the leading "parallel" axis across TensorCores (v7x has 2).
        if gen["cores"] > 1 and Q > pack:
            balanced = _round_up(-(-Q // gen["cores"]), pack)
            if pack <= balanced < tq:
                tq = balanced
    tq = min(tq, Q)
    assert tq == Q or tq % pack == 0, (tq, Q, pack)

    if full_k:
        grid = (pl.cdiv(Q, tq),)
        in_specs = [
            pl.BlockSpec((tq, D), lambda i: (i, 0)),
            # Constant block index: the (small) y prefix is DMA'd into VMEM once
            # and stays resident for the whole kernel.
            pl.BlockSpec((K, D), lambda i: (0, 0)),
        ]
        out_specs = pl.BlockSpec((tq, K, D), lambda i: (i, 0, 0))
        dim_sem = ("parallel",)
    else:
        grid = (pl.cdiv(Q, tq), pl.cdiv(K, tk))
        in_specs = [
            # x depends only on i; j is innermost, so x is never re-fetched per j step.
            pl.BlockSpec((tq, D), lambda i, j: (i, 0)),
            pl.BlockSpec((tk, D), lambda i, j: (j, 0)),
        ]
        out_specs = pl.BlockSpec((tq, tk, D), lambda i, j: (i, j, 0))
        dim_sem = ("parallel", "parallel")

    return pl.pallas_call(
        _pe1dex_kernel,
        out_shape=jax.ShapeDtypeStruct((Q, K, D), out_dtype),
        grid=grid,
        in_specs=in_specs,
        out_specs=out_specs,
        compiler_params=pltpu.CompilerParams(
            dimension_semantics=dim_sem,
            vmem_limit_bytes=int(vmem_limit_bytes)),
    )(xw, yw)


def position_encoding_1d_ex(x_weight, y_weight, query_size, key_size, *,
                            out_dtype=None, tq=None, tk=None,
                            tile_budget_bytes=None, vmem_limit_bytes=None):
    """Equivalent of PositionEncoding1DEx.forward(query_size, key_size).

    Returns out[i, j, :] = x_weight[i, :] + y_weight[j, :], shape (Q, K, dim).
    `out_dtype` (e.g. jnp.bfloat16) casts inside the kernel before the store,
    halving HBM write traffic for this purely bandwidth-bound output.
    """
    q_max, dim = x_weight.shape
    k_max, dim_y = y_weight.shape
    assert dim == dim_y, "x_emb and y_emb must share `dim`"
    Q, K = int(query_size), int(key_size)
    assert 0 < Q <= q_max and 0 < K <= k_max
    out_dtype = jnp.dtype(x_weight.dtype if out_dtype is None else out_dtype)

    # arange(Q)/arange(K) indices == contiguous prefixes of the tables.  Slice them
    # in the wrapper (cheap XLA slices) so partial tiles never read past the prefix.
    xw = x_weight[:Q]
    yw = y_weight[:K]

    # dim < 128: fold g = 128 // dim consecutive key rows into one lane-dense group so
    # the kernel's last dim is exactly 128 lanes (unmasked stores). Wrapper-side only:
    # a tiny (Q, 128) tile of x and free reshapes of contiguous rows — same kernel body.
    g = 1
    if dim < 128 and 128 % dim == 0 and K % (128 // dim) == 0:
        g = 128 // dim
    if g > 1:
        xw = jnp.tile(xw, (1, g))              # (Q, 128): negligible wrapper-side op
        yw = yw.reshape(K // g, g * dim)       # free reshape of contiguous rows
    # TODO(synk): dims that neither reach 128 nor divide it (e.g. 96) fall back to the
    # masked-store path; a fully general fold would need a key-padding step.

    out = _broadcast_add_pallas(xw, yw, out_dtype, tq=tq, tk=tk,
                                tile_budget_bytes=tile_budget_bytes,
                                vmem_limit_bytes=vmem_limit_bytes)
    if g > 1:
        out = out.reshape(Q, K, dim)           # free: layout is already row-major
    return out


if __name__ == "__main__":
    # Small shapes consistent with the module:
    # query_max_size=32, key_max_size=32, dim=128; forward(query_size=16, key_size=16).
    query_max_size, key_max_size, dim = 32, 32, 128
    query_size, key_size = 16, 16

    key = jax.random.PRNGKey(0)
    kx, ky = jax.random.split(key)
    # nn.Embedding default init: weight ~ Normal(0, 1)
    x_weight = jax.random.normal(kx, (query_max_size, dim), dtype=jnp.float32)
    y_weight = jax.random.normal(ky, (key_max_size, dim), dtype=jnp.float32)

    # Reference == the torch module: out[i, j, :] = x_weight[i] + y_weight[j].
    ref = x_weight[:query_size][:, None, :] + y_weight[:key_size][None, :, :]

    # 1) Default auto-tiled path: tk = K (resident y), 1-D grid over query tiles.
    out = jax.block_until_ready(
        position_encoding_1d_ex(x_weight, y_weight, query_size, key_size))
    assert out.shape == (query_size, key_size, dim), out.shape
    assert out.dtype == x_weight.dtype
    assert jnp.allclose(out, ref), "default path mismatch vs reference"

    # 2) Explicit small tiles purely to exercise the 2-D (i, j) grid path.
    out2 = jax.block_until_ready(position_encoding_1d_ex(
        x_weight, y_weight, query_size, key_size, tq=8, tk=8))
    assert jnp.allclose(out2, ref), "tiled (i, j) path mismatch vs reference"

    # 3) Reduced-precision output (halves HBM write traffic at real sizes).
    out3 = jax.block_until_ready(position_encoding_1d_ex(
        x_weight, y_weight, query_size, key_size, out_dtype=jnp.bfloat16))
    assert out3.dtype == jnp.bfloat16
    assert jnp.allclose(out3.astype(jnp.float32), ref, atol=3e-2, rtol=3e-2), \
        "bf16 output path mismatch vs reference"

    # 4) dim < 128: lane-dense folded layout (g = 128 // dim key rows per lane group).
    dim_s = 64
    xw_s = jax.random.normal(kx, (query_max_size, dim_s), dtype=jnp.float32)
    yw_s = jax.random.normal(ky, (key_max_size, dim_s), dtype=jnp.float32)
    ref_s = xw_s[:query_size][:, None, :] + yw_s[:key_size][None, :, :]
    out4 = jax.block_until_ready(position_encoding_1d_ex(
        xw_s, yw_s, query_size, key_size))
    assert out4.shape == (query_size, key_size, dim_s), out4.shape
    assert jnp.allclose(out4, ref_s), "folded dim<128 path mismatch vs reference"

    print("KERNEL_OK")
</pallas_src>

<mosaic_0001>
module attributes {stable_mosaic.version = 11 : i64} {
  func.func @_pe1dex_kernel(%arg0: i32, %arg1: memref<16x128xf32, #tpu.memory_space<vmem>>, %arg2: memref<16x128xf32, #tpu.memory_space<vmem>>, %arg3: memref<16x16x128xf32, #tpu.memory_space<vmem>>) attributes {dimension_semantics = [#tpu.dimension_semantics<parallel>], iteration_bounds = array<i64: 1>, scalar_prefetch = 0 : i64, scratch_operands = 0 : i64, tpu.core_type = #tpu.core_type<tc>, window_params = [{transform_indices = @transform_0, window_bounds = array<i64: 16, 128>}, {pipeline_mode = #tpu.pipeline_mode<synchronous>, transform_indices = @transform_1, window_bounds = array<i64: 16, 128>}, {transform_indices = @transform_2, window_bounds = array<i64: 16, 16, 128>}]} {
    %c0 = arith.constant 0 : index
    %c0_0 = arith.constant 0 : index
    %0 = vector.load %arg1[%c0, %c0_0] : memref<16x128xf32, #tpu.memory_space<vmem>>, vector<16x128xf32>
    %1 = vector.shape_cast %0 : vector<16x128xf32> to vector<16x1x128xf32>
    %c0_1 = arith.constant 0 : index
    %c0_2 = arith.constant 0 : index
    %2 = vector.load %arg2[%c0_1, %c0_2] : memref<16x128xf32, #tpu.memory_space<vmem>>, vector<16x128xf32>
    %3 = vector.shape_cast %2 : vector<16x128xf32> to vector<1x16x128xf32>
    %4 = vector.broadcast %1 : vector<16x1x128xf32> to vector<16x16x128xf32>
    %5 = vector.broadcast %3 : vector<1x16x128xf32> to vector<16x16x128xf32>
    %6 = arith.addf %4, %5 : vector<16x16x128xf32>
    %c0_3 = arith.constant 0 : index
    %c0_4 = arith.constant 0 : index
    %c0_5 = arith.constant 0 : index
    %7 = vector.load %arg3[%c0_3, %c0_4, %c0_5] : memref<16x16x128xf32, #tpu.memory_space<vmem>>, vector<16x16x128xf32>
    tpu.vector_store %arg3[%c0_3, %c0_4, %c0_5], %6 {strides = array<i32>} : memref<16x16x128xf32, #tpu.memory_space<vmem>>, vector<16x16x128xf32>,
    return
  }
  func.func @transform_0(%arg0: i32) -> (i32, i32) {
    %c0_i32 = arith.constant 0 : i32
    %c0_i32_0 = arith.constant 0 : i32
    return %arg0, %c0_i32 : i32, i32
  }
  func.func @transform_1(%arg0: i32) -> (i32, i32) {
    %c0_i32 = arith.constant 0 : i32
    %c0_i32_0 = arith.constant 0 : i32
    %c0_i32_1 = arith.constant 0 : i32
    return %c0_i32, %c0_i32_0 : i32, i32
  }
  func.func @transform_2(%arg0: i32) -> (i32, i32, i32) {
    %c0_i32 = arith.constant 0 : i32
    %c0_i32_0 = arith.constant 0 : i32
    %c0_i32_1 = arith.constant 0 : i32
    return %arg0, %c0_i32, %c0_i32_0 : i32, i32, i32
  }
}

</mosaic_0001>

<bundles_post_ra>
// kernel: tpu_custom_call.1
= control target key start
LH: loop header
LB: loop body
LE: loop exit
PB: predicated region body
PF: predicated region fallthrough
CT: control target
= control target key end

     0   :  { %7 = vsyncpa [#allocation3], 0  ;;  %s337_s0 = inlined_call_operand.hbm [shape: f32[16,128], index: 0, kind: input, shape index: {}]   ;;  %s338_s1 = inlined_call_operand.hbm [shape: f32[16,128], index: 1, kind: input, shape index: {}]   ;;  %s339_s2 = inlined_call_operand.hbm [shape: f32[16,16,128], index: 2, kind: output, shape index: {}]  }
   0x1   :  { %8 = vsyncpa [#allocation6], 0 }
   0x2   :  { %9 = vsyncpa [#allocation4], 0  ;;  %s14_s11 = sshll.u32 %s337_s0, 4  ;;  %s263_s12 = smov [#allocation2]   ;;  %s15_s11 = int_to_ptr.hbm [resolvable:$true] %s14_s11 }
   0x3   :  { %s16_s13 = sshll.u32 %s263_s12, 4  ;;  %s27_s16 = sshll.u32 %s338_s1, 4  ;;  %s17_s13 = int_to_ptr.vmem [resolvable:$true] %s16_s13  ;;  %s28_s16 = int_to_ptr.hbm [resolvable:$true] %s27_s16 }
   0x4   :  { %s264_s17 = smov 128   ;;  %s265_s18 = smov 8  }
   0x5   :  { %22 = dma.hbm_to_vmem [thread:$0]  %s15_s11, 256, %s17_s13, [#allocation3], %s264_s17, %s264_s17, %s265_s18  }
   0x6   :  { %s266_s19 = smov [#allocation5]  }
   0x7   :  { %s29_s20 = sshll.u32 %s266_s19, 4  ;;  %s30_s20 = int_to_ptr.vmem [resolvable:$true] %s29_s20 }
   0x8   :  { %35 = dma.hbm_to_vmem [thread:$0]  %s28_s16, 256, %s30_s20, [#allocation6], %s264_s17, %s264_s17, %s265_s18  }
   0x9   :  { %257 = dma.done.wait [#allocation3], 256  }
   0xa   :  { %258 = vsyncadd [#allocation3], 4294967040 }
   0xb   :  { %259 = dma.done.wait [#allocation6], 256  }
   0xc   :  { %260 = vsyncadd [#allocation6], 4294967040  ;;  %v44_v0 = vld [vmem:[#allocation2] sm:$0xff]  ;;  %v295_v1 = vld [vmem:[#allocation5] sm:$0xff]  ;;  %s267_s0 = smov [#allocation7]   ;;  %s166_s23 = sshll.u32 %s339_s2, 4  ;;  %s167_s23 = int_to_ptr.hbm [resolvable:$true] %s166_s23 }
   0xd   :  { %v297_v2 = vld [vmem:[#allocation5 + $0x8] sm:$0xff]  ;;  %v64_v3 = vperm.slane %v44_v0, 0  ;;  %v48_v4 = vrot.slane %v44_v0, 1  ;;  %v49_v5 = vrot.slane %v44_v0, 2  ;;  %v50_v6 = vrot.slane %v44_v0, 3  ;;  %v45_v24 = vld [vmem:[#allocation2 + $0x8] sm:$0xff] }
   0xe   :  { %v51_v7 = vrot.slane %v44_v0, 4  ;;  %v52_v8 = vrot.slane %v44_v0, 5  ;;  %v53_v14 = vrot.slane %v44_v0, 6  ;;  %v54_v22 = vrot.slane %v44_v0, 7  ;;  %s164_s1 = sshll.u32 %s267_s0, 4  ;;  %s165_s1 = int_to_ptr.vmem [resolvable:$true] %s164_s1 }
   0xf   :  { %v96_v9 = vadd.f32 %v64_v3, %v295_v1  ;;  %v97_v10 = vadd.f32 %v64_v3, %v297_v2  ;;  %v65_v11 = vperm.slane %v48_v4, 0  ;;  %v66_v12 = vperm.slane %v49_v5, 0 }
  0x10   :  { %v67_v13 = vperm.slane %v50_v6, 0  ;;  %v68_v18 = vperm.slane %v51_v7, 0  ;;  %v69_v21 = vperm.slane %v52_v8, 0  ;;  %v70_v26 = vperm.slane %v53_v14, 0 }
  0x11   :  { %128 = vst [vmem:[#allocation7] sm:$0xff] %v96_v9  ;;  %v98_v15 = vadd.f32 %v65_v11, %v295_v1  ;;  %v99_v16 = vadd.f32 %v65_v11, %v297_v2  ;;  %v100_v17 = vadd.f32 %v66_v12, %v295_v1  ;;  %v101_v19 = vadd.f32 %v66_v12, %v297_v2 }
  0x12   :  { %129 = vst [vmem:[#allocation7 + $0x8] sm:$0xff] %v97_v10  ;;  %v102_v20 = vadd.f32 %v67_v13, %v295_v1  ;;  %v103_v23 = vadd.f32 %v67_v13, %v297_v2  ;;  %v104_v25 = vadd.f32 %v68_v18, %v295_v1  ;;  %v105_v27 = vadd.f32 %v68_v18, %v297_v2 }
  0x13   :  { %130 = vst [vmem:[#allocation7 + $0x10] sm:$0xff] %v98_v15  ;;  %v106_v28 = vadd.f32 %v69_v21, %v295_v1  ;;  %v71_v29 = vperm.slane %v54_v22, 0  ;;  %v55_v30 = vrot.slane %v45_v24, 1  ;;  %v107_v31 = vadd.f32 %v69_v21, %v297_v2 }
  0x14   :  { %131 = vst [vmem:[#allocation7 + $0x18] sm:$0xff] %v99_v16  ;;  %v108_v32 = vadd.f32 %v70_v26, %v295_v1  ;;  %v72_v33 = vperm.slane %v45_v24, 0  ;;  %v56_v34 = vrot.slane %v45_v24, 2  ;;  %v109_v35 = vadd.f32 %v70_v26, %v297_v2 }
  0x15   :  { %132 = vst [vmem:[#allocation7 + $0x20] sm:$0xff] %v100_v17  ;;  %v110_v36 = vadd.f32 %v71_v29, %v295_v1  ;;  %v73_v37 = vperm.slane %v55_v30, 0  ;;  %v57_v38 = vrot.slane %v45_v24, 3  ;;  %v111_v39 = vadd.f32 %v71_v29, %v297_v2 }
  0x16   :  { %133 = vst [vmem:[#allocation7 + $0x28] sm:$0xff] %v101_v19  ;;  %v112_v40 = vadd.f32 %v72_v33, %v295_v1  ;;  %v74_v41 = vperm.slane %v56_v34, 0  ;;  %v58_v42 = vrot.slane %v45_v24, 4  ;;  %v113_v43 = vadd.f32 %v72_v33, %v297_v2 }
  0x17   :  { %134 = vst [vmem:[#allocation7 + $0x30] sm:$0xff] %v102_v20  ;;  %v114_v44 = vadd.f32 %v73_v37, %v295_v1  ;;  %v75_v45 = vperm.slane %v57_v38, 0  ;;  %v59_v46 = vrot.slane %v45_v24, 5  ;;  %v115_v47 = vadd.f32 %v73_v37, %v297_v2 }
  0x18   :  { %135 = vst [vmem:[#allocation7 + $0x38] sm:$0xff] %v103_v23  ;;  %v116_v48 = vadd.f32 %v74_v41, %v295_v1  ;;  %v76_v49 = vperm.slane %v58_v42, 0  ;;  %v60_v50 = vrot.slane %v45_v24, 6  ;;  %v117_v51 = vadd.f32 %v74_v41, %v297_v2 }
  0x19   :  { %136 = vst [vmem:[#allocation7 + $0x40] sm:$0xff] %v104_v25  ;;  %v118_v52 = vadd.f32 %v75_v45, %v295_v1  ;;  %v77_v53 = vperm.slane %v59_v46, 0  ;;  %v61_v54 = vrot.slane %v45_v24, 7  ;;  %v119_v55 = vadd.f32 %v75_v45, %v297_v2 }
  0x1a   :  { %137 = vst [vmem:[#allocation7 + $0x48] sm:$0xff] %v105_v27  ;;  %v120_v56 = vadd.f32 %v76_v49, %v295_v1  ;;  %v78_v57 = vperm.slane %v60_v50, 0  ;;  %v121_v58 = vadd.f32 %v76_v49, %v297_v2 }
  0x1b   :  { %138 = vst [vmem:[#allocation7 + $0x50] sm:$0xff] %v106_v28  ;;  %v122_v59 = vadd.f32 %v77_v53, %v295_v1  ;;  %v79_v60 = vperm.slane %v61_v54, 0  ;;  %v123_v61 = vadd.f32 %v77_v53, %v297_v2 }
  0x1c   :  { %139 = vst [vmem:[#allocation7 + $0x58] sm:$0xff] %v107_v31  ;;  %v124_v62 = vadd.f32 %v78_v57, %v295_v1  ;;  %v125_v63 = vadd.f32 %v78_v57, %v297_v2 }
  0x1d   :  { %140 = vst [vmem:[#allocation7 + $0x60] sm:$0xff] %v108_v32  ;;  %v126_v0 = vadd.f32 %v79_v60, %v295_v1  ;;  %v127_v3 = vadd.f32 %v79_v60, %v297_v2 }
  0x1e   :  { %141 = vst [vmem:[#allocation7 + $0x68] sm:$0xff] %v109_v35 }
  0x1f   :  { %142 = vst [vmem:[#allocation7 + $0x70] sm:$0xff] %v110_v36 }
  0x20   :  { %143 = vst [vmem:[#allocation7 + $0x78] sm:$0xff] %v111_v39 }
  0x21   :  { %144 = vst [vmem:[#allocation7 + $0x80] sm:$0xff] %v112_v40 }
  0x22   :  { %145 = vst [vmem:[#allocation7 + $0x88] sm:$0xff] %v113_v43 }
  0x23   :  { %146 = vst [vmem:[#allocation7 + $0x90] sm:$0xff] %v114_v44 }
  0x24   :  { %147 = vst [vmem:[#allocation7 + $0x98] sm:$0xff] %v115_v47 }
  0x25   :  { %148 = vst [vmem:[#allocation7 + $0xa0] sm:$0xff] %v116_v48 }
  0x26   :  { %149 = vst [vmem:[#allocation7 + $0xa8] sm:$0xff] %v117_v51 }
  0x27   :  { %150 = vst [vmem:[#allocation7 + $0xb0] sm:$0xff] %v118_v52 }
  0x28   :  { %151 = vst [vmem:[#allocation7 + $0xb8] sm:$0xff] %v119_v55 }
  0x29   :  { %152 = vst [vmem:[#allocation7 + $0xc0] sm:$0xff] %v120_v56 }
  0x2a   :  { %153 = vst [vmem:[#allocation7 + $0xc8] sm:$0xff] %v121_v58 }
  0x2b   :  { %154 = vst [vmem:[#allocation7 + $0xd0] sm:$0xff] %v122_v59 }
  0x2c   :  { %155 = vst [vmem:[#allocation7 + $0xd8] sm:$0xff] %v123_v61 }
  0x2d   :  { %156 = vst [vmem:[#allocation7 + $0xe0] sm:$0xff] %v124_v62 }
  0x2e   :  { %157 = vst [vmem:[#allocation7 + $0xe8] sm:$0xff] %v125_v63 }
  0x2f   :  { %158 = vst [vmem:[#allocation7 + $0xf0] sm:$0xff] %v126_v0 }
  0x30   :  { %159 = vst [vmem:[#allocation7 + $0xf8] sm:$0xff] %v127_v3 }
  0x31   :  { %172 = dma.vmem_to_hbm [thread:$0]  %s165_s1, 4096, %s167_s23, [#allocation4], %s264_s17, %s264_s17, %s265_s18  }
  0x32   :  { %261 = dma.done.wait [#allocation4], 4096  }
  0x33   :  { %262 = vsyncadd [#allocation4], 4294963200 }
  0x34   :  { %177 = vsyncpa [#allocation3], 1 }
  0x35   :  { %178 = vsyncpa [#allocation6], 1 }
  0x36   :  { %179 = vsyncpa [#allocation4], 1 }

</bundles_post_ra>
